<compile_context>
chip_gen: v5e
topology: v5e:2x2
jax: 0.10.0
libtpu: 0.0.40
codegen_flags: <defaults>
</compile_context>

<pallas_src>
import jax
import jax.numpy as jnp
from jax import lax
from jax.experimental import pallas as pl
from jax.experimental.pallas import tpu as pltpu


def _round_up(x, m):
    return ((x + m - 1) // m) * m


def mf_kernel(u_idx_ref, i_idx_ref, pT_ref, qT_ref, out_ref):
    """One grid step computes Bt predictions (lane-dense).

    u_idx_ref / i_idx_ref : (1, Bt) int32  index tile for this step
    pT_ref  : (F+2, R) f32  bias-augmented user table (transposed), resident
    qT_ref  : (F+2, R) f32  bias-augmented item table (transposed), resident
    out_ref : (1, Bt) f32  predictions (dot + b_u + b_i)
    """
    u_idx = u_idx_ref[...]                     # (1, Bt) int32
    i_idx = i_idx_ref[...]                     # (1, Bt) int32
    bt = u_idx.shape[1]
    rows = pT_ref.shape[1]                     # R (shared padded row count)

    # One shared iota feeds both one-hot compares (VPU work halved vs. two).
    row_iota = lax.broadcasted_iota(jnp.int32, (rows, bt), 0)
    u_oh = (row_iota == u_idx).astype(jnp.float32)      # (R, Bt)
    i_oh = (row_iota == i_idx).astype(jnp.float32)      # (R, Bt)

    # Row gather as a one-hot matmul on the MXU: (F+2, R) @ (R, Bt) -> (F+2, Bt).
    p_g = jnp.dot(pT_ref[...], u_oh, preferred_element_type=jnp.float32)
    q_g = jnp.dot(qT_ref[...], i_oh, preferred_element_type=jnp.float32)

    # Factor reduction over sublanes.  Because the tables carry the biases in
    # the last two rows ([...,b_u,1] x [...,1,b_i]), this single reduction
    # already includes + b_u + b_i.  Lane-dense (1, Bt) unmasked store.
    out_ref[...] = jnp.sum(p_g * q_g, axis=0, keepdims=True)


def mf_forward(user, item, p, q, b_u, b_i, *, bt=None):
    """user, item: int [B]; p: [U, F]; q: [I, F]; b_u: [U]; b_i: [I] -> [B] f32."""
    B = user.shape[0]
    num_user, num_factor = p.shape
    num_item = q.shape[0]

    # Adaptive lane-dense batch tile: 128 minimum (unmasked stores / v5e MXU),
    # up to 1024 for large batches (amortizes the fixed per-grid-step cost).
    if bt is None:
        bt = max(128, min(_round_up(B, 128), 1024))

    num_tiles = pl.cdiv(B, bt)
    b_pad = num_tiles * bt

    # Pad the index vectors to whole lane-dense tiles (index 0 is always
    # valid; padded results are discarded below).
    user_t = jnp.pad(user.astype(jnp.int32), (0, b_pad - B)).reshape(num_tiles, bt)
    item_t = jnp.pad(item.astype(jnp.int32), (0, b_pad - B)).reshape(num_tiles, bt)

    # Bias-augmented, transposed, lane-padded tables (factor dim on sublanes,
    # row dim on lanes).  Both share the same padded lane width R so the
    # kernel can share one iota.
    faug = num_factor + 2
    R = _round_up(max(num_user, num_item), 128)

    pT = jnp.asarray(p, jnp.float32).T                    # (F, U)
    qT = jnp.asarray(q, jnp.float32).T                    # (F, I)

    pT_aug = jnp.zeros((faug, R), jnp.float32)
    pT_aug = pT_aug.at[:num_factor, :num_user].set(pT)
    pT_aug = pT_aug.at[num_factor, :num_user].set(jnp.asarray(b_u, jnp.float32))
    pT_aug = pT_aug.at[num_factor + 1, :num_user].set(1.0)

    qT_aug = jnp.zeros((faug, R), jnp.float32)
    qT_aug = qT_aug.at[:num_factor, :num_item].set(qT)
    qT_aug = qT_aug.at[num_factor, :num_item].set(1.0)
    qT_aug = qT_aug.at[num_factor + 1, :num_item].set(jnp.asarray(b_i, jnp.float32))

    out = pl.pallas_call(
        mf_kernel,
        out_shape=jax.ShapeDtypeStruct((num_tiles, bt), jnp.float32),
        grid=(num_tiles,),
        in_specs=[
            pl.BlockSpec((1, bt), lambda t: (t, 0)),          # user idx tile
            pl.BlockSpec((1, bt), lambda t: (t, 0)),          # item idx tile
            pl.BlockSpec((faug, R), lambda t: (0, 0)),        # pT_aug (resident)
            pl.BlockSpec((faug, R), lambda t: (0, 0)),        # qT_aug (resident)
        ],
        out_specs=pl.BlockSpec((1, bt), lambda t: (t, 0)),
        compiler_params=pltpu.CompilerParams(
            dimension_semantics=("parallel",),  # v7x: batch tiles can shard over TCs
        ),
    )(user_t, item_t, pT_aug, qT_aug)

    return out.reshape(b_pad)[:B]


def mf_reference(user, item, p, q, b_u, b_i):
    ul = jnp.take(p, user, axis=0)
    il = jnp.take(q, item, axis=0)
    return jnp.sum(ul * il, axis=1) + jnp.take(b_u, user) + jnp.take(b_i, item)


if __name__ == "__main__":
    num_user, num_item, num_factor = 64, 96, 30
    batch = 8

    key = jax.random.PRNGKey(0)
    k_p, k_q, k_bu, k_bi, k_u, k_i = jax.random.split(key, 6)

    # Deterministic parameter init matching torch.normal(mean=0, std=0.01) shapes.
    p = 0.01 * jax.random.normal(k_p, (num_user, num_factor), dtype=jnp.float32)
    q = 0.01 * jax.random.normal(k_q, (num_item, num_factor), dtype=jnp.float32)
    b_u = 0.01 * jax.random.normal(k_bu, (num_user,), dtype=jnp.float32)
    b_i = 0.01 * jax.random.normal(k_bi, (num_item,), dtype=jnp.float32)

    user = jax.random.randint(k_u, (batch,), 0, num_user, dtype=jnp.int32)
    item = jax.random.randint(k_i, (batch,), 0, num_item, dtype=jnp.int32)

    out = mf_forward(user, item, p, q, b_u, b_i)
    out = jax.block_until_ready(out)

    ref = mf_reference(user, item, p, q, b_u, b_i)
    assert out.shape == (batch,)
    assert jnp.allclose(out, ref, atol=1e-5, rtol=1e-5), (out, ref)

    print("KERNEL_OK")
</pallas_src>

<mosaic_0001>
module attributes {stable_mosaic.version = 11 : i64} {
  func.func @mf_kernel(%arg0: i32, %arg1: memref<1x128xi32, #tpu.memory_space<vmem>>, %arg2: memref<1x128xi32, #tpu.memory_space<vmem>>, %arg3: memref<32x128xf32, #tpu.memory_space<vmem>>, %arg4: memref<32x128xf32, #tpu.memory_space<vmem>>, %arg5: memref<1x128xf32, #tpu.memory_space<vmem>>) attributes {dimension_semantics = [#tpu.dimension_semantics<parallel>], iteration_bounds = array<i64: 1>, scalar_prefetch = 0 : i64, scratch_operands = 0 : i64, tpu.core_type = #tpu.core_type<tc>, window_params = [{transform_indices = @transform_0, window_bounds = array<i64: 1, 128>}, {transform_indices = @transform_1, window_bounds = array<i64: 1, 128>}, {pipeline_mode = #tpu.pipeline_mode<synchronous>, transform_indices = @transform_2, window_bounds = array<i64: 32, 128>}, {pipeline_mode = #tpu.pipeline_mode<synchronous>, transform_indices = @transform_3, window_bounds = array<i64: 32, 128>}, {transform_indices = @transform_4, window_bounds = array<i64: 1, 128>}]} {
    %c0 = arith.constant 0 : index
    %c0_0 = arith.constant 0 : index
    %0 = vector.load %arg1[%c0, %c0_0] : memref<1x128xi32, #tpu.memory_space<vmem>>, vector<1x128xi32>
    %c0_1 = arith.constant 0 : index
    %c0_2 = arith.constant 0 : index
    %1 = vector.load %arg2[%c0_1, %c0_2] : memref<1x128xi32, #tpu.memory_space<vmem>>, vector<1x128xi32>
    %2 = tpu.iota {dimensions = array<i32: 0>} : vector<128x128xi32>
    %3 = vector.broadcast %0 : vector<1x128xi32> to vector<128x128xi32>
    %4 = arith.cmpi eq, %2, %3 : vector<128x128xi32>
    %5 = arith.extui %4 : vector<128x128xi1> to vector<128x128xi32>
    %6 = arith.sitofp %5 : vector<128x128xi32> to vector<128x128xf32>
    %7 = vector.broadcast %1 : vector<1x128xi32> to vector<128x128xi32>
    %8 = arith.cmpi eq, %2, %7 : vector<128x128xi32>
    %9 = arith.extui %8 : vector<128x128xi1> to vector<128x128xi32>
    %10 = arith.sitofp %9 : vector<128x128xi32> to vector<128x128xf32>
    %c0_3 = arith.constant 0 : index
    %c0_4 = arith.constant 0 : index
    %11 = vector.load %arg3[%c0_3, %c0_4] : memref<32x128xf32, #tpu.memory_space<vmem>>, vector<32x128xf32>
    %cst = arith.constant dense<0.000000e+00> : vector<32x128xf32>
    %12 = tpu.matmul %11, %6, %cst {dimension_numbers = #tpu.dot_dimension_numbers<[1], [0], [0], [1], [0, 0, 1, 1], [], []>} : vector<32x128xf32>, vector<128x128xf32>, vector<32x128xf32> -> vector<32x128xf32>
    %c0_5 = arith.constant 0 : index
    %c0_6 = arith.constant 0 : index
    %13 = vector.load %arg4[%c0_5, %c0_6] : memref<32x128xf32, #tpu.memory_space<vmem>>, vector<32x128xf32>
    %cst_7 = arith.constant dense<0.000000e+00> : vector<32x128xf32>
    %14 = tpu.matmul %13, %10, %cst_7 {dimension_numbers = #tpu.dot_dimension_numbers<[1], [0], [0], [1], [0, 0, 1, 1], [], []>} : vector<32x128xf32>, vector<128x128xf32>, vector<32x128xf32> -> vector<32x128xf32>
    %15 = arith.mulf %12, %14 : vector<32x128xf32>
    %cst_8 = arith.constant dense<0.000000e+00> : vector<128xf32>
    %16 = vector.multi_reduction <add>, %15, %cst_8 [0] : vector<32x128xf32> to vector<128xf32>
    %17 = vector.shape_cast %16 : vector<128xf32> to vector<1x128xf32>
    %c0_9 = arith.constant 0 : index
    %c0_10 = arith.constant 0 : index
    %18 = vector.load %arg5[%c0_9, %c0_10] : memref<1x128xf32, #tpu.memory_space<vmem>>, vector<1x128xf32>
    tpu.vector_store %arg5[%c0_9, %c0_10], %17 {strides = array<i32>} : memref<1x128xf32, #tpu.memory_space<vmem>>, vector<1x128xf32>,
    return
  }
  func.func @transform_0(%arg0: i32) -> (i32, i32) {
    %c0_i32 = arith.constant 0 : i32
    %c0_i32_0 = arith.constant 0 : i32
    return %arg0, %c0_i32 : i32, i32
  }
  func.func @transform_1(%arg0: i32) -> (i32, i32) {
    %c0_i32 = arith.constant 0 : i32
    %c0_i32_0 = arith.constant 0 : i32
    return %arg0, %c0_i32 : i32, i32
  }
  func.func @transform_2(%arg0: i32) -> (i32, i32) {
    %c0_i32 = arith.constant 0 : i32
    %c0_i32_0 = arith.constant 0 : i32
    %c0_i32_1 = arith.constant 0 : i32
    return %c0_i32, %c0_i32_0 : i32, i32
  }
  func.func @transform_3(%arg0: i32) -> (i32, i32) {
    %c0_i32 = arith.constant 0 : i32
    %c0_i32_0 = arith.constant 0 : i32
    %c0_i32_1 = arith.constant 0 : i32
    return %c0_i32, %c0_i32_0 : i32, i32
  }
  func.func @transform_4(%arg0: i32) -> (i32, i32) {
    %c0_i32 = arith.constant 0 : i32
    %c0_i32_0 = arith.constant 0 : i32
    return %arg0, %c0_i32 : i32, i32
  }
}

</mosaic_0001>

<bundles_post_ra>
// kernel: tpu_custom_call.1
= control target key start
LH: loop header
LB: loop body
LE: loop exit
PB: predicated region body
PF: predicated region fallthrough
CT: control target
= control target key end

     0   :  { %9 = vsyncpa [#allocation3], 0  ;;  %s694_s0 = inlined_call_operand.hbm [shape: s32[1,128], index: 0, kind: input, shape index: {}]   ;;  %s695_s1 = inlined_call_operand.hbm [shape: s32[1,128], index: 1, kind: input, shape index: {}]   ;;  %s696_s2 = inlined_call_operand.hbm [shape: f32[32,128], index: 2, kind: input, shape index: {}]   ;;  %s697_s3 = inlined_call_operand.hbm [shape: f32[32,128], index: 3, kind: input, shape index: {}]   ;;  %s698_s4 = inlined_call_operand.hbm [shape: f32[1,128], index: 4, kind: output, shape index: {}]  }
   0x1   :  { %10 = vsyncpa [#allocation6], 0 }
   0x2   :  { %11 = vsyncpa [#allocation9], 0  ;;  %s29_s17 = sshll.u32 %s695_s1, 4  ;;  %s30_s17 = int_to_ptr.hbm [resolvable:$true] %s29_s17 }
   0x3   :  { %12 = vsyncpa [#allocation4], 0  ;;  %s527_s18 = smov [#allocation5]   ;;  %s18_s22 = sshll.u32 %s694_s0, 4  ;;  %s19_s22 = int_to_ptr.hbm [resolvable:$true] %s18_s22 }
   0x4   :  { %s31_s19 = sshll.u32 %s527_s18, 4  ;;  %s528_s23 = smov [#allocation2]   ;;  %s32_s19 = int_to_ptr.vmem [resolvable:$true] %s31_s19 }
   0x5   :  { %34 = dma.hbm_to_vmem [thread:$0]  %s30_s17, 16, %s32_s19, [#allocation6]  }
   0x6   :  { %s20_s24 = sshll.u32 %s528_s23, 4  ;;  %s39_s27 = sshll.u32 %s696_s2, 4  ;;  %s21_s24 = int_to_ptr.vmem [resolvable:$true] %s20_s24  ;;  %s40_s27 = int_to_ptr.hbm [resolvable:$true] %s39_s27 }
   0x7   :  { %23 = dma.hbm_to_vmem [thread:$0]  %s19_s22, 16, %s21_s24, [#allocation3]  }
   0x8   :  { %s529_s1 = smov [#allocation7]   ;;  %s52_s5 = sshll.u32 %s697_s3, 4  ;;  %s53_s5 = int_to_ptr.hbm [resolvable:$true] %s52_s5 }
   0x9   :  { %s41_s28 = sshll.u32 %s529_s1, 4  ;;  %s530_s6 = smov 128   ;;  %s42_s28 = int_to_ptr.vmem [resolvable:$true] %s41_s28 }
   0xa   :  { %s531_s0 = smov 8   ;;  %s532_s7 = smov [#allocation8]  }
   0xb   :  { %47 = dma.hbm_to_vmem [thread:$0]  %s40_s27, 512, %s42_s28, [#allocation6], %s530_s6, %s530_s6, %s531_s0  }
   0xc   :  { %s54_s8 = sshll.u32 %s532_s7, 4  ;;  %s55_s8 = int_to_ptr.vmem [resolvable:$true] %s54_s8 }
   0xd   :  { %60 = dma.hbm_to_vmem [thread:$0]  %s53_s5, 512, %s55_s8, [#allocation9], %s530_s6, %s530_s6, %s531_s0  }
   0xe   :  { %519 = dma.done.wait [#allocation3], 16  }
   0xf   :  { %520 = vsyncadd [#allocation3], 4294967280 }
  0x10   :  { %521 = dma.done.wait [#allocation6], 528  }
  0x11   :  { %522 = vsyncadd [#allocation6], 4294966768 }
  0x12   :  { %523 = dma.done.wait [#allocation9], 512  }
  0x13   :  { %524 = vsyncadd [#allocation9], 4294966784  ;;  %v79_v0 = vlaneseq  ;;  %v577_v5 = vld [vmem:[#allocation2] ss:$0 sm:$0xff]  ;;  %v579_v6 = vld [vmem:[#allocation5] ss:$0 sm:$0xff] }
  0x14   :  { %v533_v8 = vmov 1.0   ;;  %v194_v20 = vld [vmem:[#allocation7] sm:$0xff]  ;;  %v196_v21 = vld [vmem:[#allocation7 + $0x10] sm:$0xff]  ;;  %v195_v24 = vld [vmem:[#allocation7 + $0x8] sm:$0xff]  ;;  %s534_s2 = smov [#allocation10]   ;;  %s281_s11 = sshll.u32 %s698_s4, 4  ;;  %s282_s11 = int_to_ptr.hbm [resolvable:$true] %s281_s11 }
  0x15   :  { %v572_v1 = vshrl.u32 %v79_v0, 7  ;;  %v227_v22 = vld [vmem:[#allocation8] sm:$0xff]  ;;  %v229_v23 = vld [vmem:[#allocation8 + $0x10] sm:$0xff]  ;;  %v197_v25 = vld [vmem:[#allocation7 + $0x18] sm:$0xff]  ;;  %s279_s3 = sshll.u32 %s534_s2, 4  ;;  %s280_s3 = int_to_ptr.vmem [resolvable:$true] %s279_s3 }
  0x16   :  { %v228_v26 = vld [vmem:[#allocation8 + $0x8] sm:$0xff]  ;;  %v230_v27 = vld [vmem:[#allocation8 + $0x18] sm:$0xff] }
  0x17   :  { %v95_v2 = vadd.s32 120, %v572_v1  ;;  %v94_v3 = vadd.s32 112, %v572_v1  ;;  %v93_v4 = vadd.s32 104, %v572_v1  ;;  %v92_v7 = vadd.s32 96, %v572_v1 }
  0x18   :  { %v91_v9 = vadd.s32 88, %v572_v1  ;;  %v90_v10 = vadd.s32 80, %v572_v1  ;;  %v89_v11 = vadd.s32 72, %v572_v1  ;;  %v88_v12 = vadd.s32 64, %v572_v1 }
  0x19   :  { %vm112_vm0 = vcmp.eq.s32.totalorder %v95_v2, %v577_v5  ;;  %vm111_vm1 = vcmp.eq.s32.totalorder %v94_v3, %v577_v5  ;;  %vm161_vm2 = vcmp.eq.s32.totalorder %v95_v2, %v579_v6  ;;  %vm160_vm3 = vcmp.eq.s32.totalorder %v94_v3, %v579_v6 }
  0x1a   :  { %325 = vmatpush.msk.msra.mxu0 %vm112_vm0, %v533_v8  ;;  %357 = vmatpush.msk.msra.mxu2 %vm112_vm0, %v533_v8  ;;  %vm110_vm4 = vcmp.eq.s32.totalorder %v93_v4, %v577_v5  ;;  %vm159_vm5 = vcmp.eq.s32.totalorder %v93_v4, %v579_v6  ;;  %vm109_vm6 = vcmp.eq.s32.totalorder %v92_v7, %v577_v5  ;;  %v87_v13 = vadd.s32 56, %v572_v1 }
  0x1b   :  { %341 = vmatpush.msk.msra.mxu1 %vm161_vm2, %v533_v8  ;;  %373 = vmatpush.msk.msra.mxu3 %vm161_vm2, %v533_v8  ;;  %vm158_vm7 = vcmp.eq.s32.totalorder %v92_v7, %v579_v6  ;;  %vm108_vm8 = vcmp.eq.s32.totalorder %v91_v9, %v577_v5  ;;  %vm157_vm9 = vcmp.eq.s32.totalorder %v91_v9, %v579_v6  ;;  %v86_v14 = vadd.s32 48, %v572_v1 }
  0x1c   :  { %326 = vmatpush.msk.msra.mxu0 %vm111_vm1, %v533_v8  ;;  %358 = vmatpush.msk.msra.mxu2 %vm111_vm1, %v533_v8  ;;  %vm107_vm10 = vcmp.eq.s32.totalorder %v90_v10, %v577_v5  ;;  %vm156_vm11 = vcmp.eq.s32.totalorder %v90_v10, %v579_v6  ;;  %vm106_vm12 = vcmp.eq.s32.totalorder %v89_v11, %v577_v5  ;;  %v85_v15 = vadd.s32 40, %v572_v1 }
  0x1d   :  { %342 = vmatpush.msk.msra.mxu1 %vm160_vm3, %v533_v8  ;;  %374 = vmatpush.msk.msra.mxu3 %vm160_vm3, %v533_v8  ;;  %vm155_vm13 = vcmp.eq.s32.totalorder %v89_v11, %v579_v6  ;;  %vm105_vm14 = vcmp.eq.s32.totalorder %v88_v12, %v577_v5  ;;  %vm154_vm15 = vcmp.eq.s32.totalorder %v88_v12, %v579_v6  ;;  %v84_v16 = vadd.s32 32, %v572_v1 }
  0x1e   :  { %327 = vmatpush.msk.msra.mxu0 %vm110_vm4, %v533_v8  ;;  %359 = vmatpush.msk.msra.mxu2 %vm110_vm4, %v533_v8  ;;  %vm104_vm0 = vcmp.eq.s32.totalorder %v87_v13, %v577_v5  ;;  %vm153_vm1 = vcmp.eq.s32.totalorder %v87_v13, %v579_v6  ;;  %vm103_vm2 = vcmp.eq.s32.totalorder %v86_v14, %v577_v5  ;;  %v83_v17 = vadd.s32 24, %v572_v1 }
  0x1f   :  { %343 = vmatpush.msk.msra.mxu1 %vm159_vm5, %v533_v8  ;;  %375 = vmatpush.msk.msra.mxu3 %vm159_vm5, %v533_v8  ;;  %vm152_vm3 = vcmp.eq.s32.totalorder %v86_v14, %v579_v6  ;;  %vm102_vm4 = vcmp.eq.s32.totalorder %v85_v15, %v577_v5  ;;  %vm151_vm5 = vcmp.eq.s32.totalorder %v85_v15, %v579_v6  ;;  %v82_v18 = vadd.s32 16, %v572_v1 }
  0x20   :  { %328 = vmatpush.msk.msra.mxu0 %vm109_vm6, %v533_v8  ;;  %360 = vmatpush.msk.msra.mxu2 %vm109_vm6, %v533_v8  ;;  %vm101_vm6 = vcmp.eq.s32.totalorder %v84_v16, %v577_v5  ;;  %v81_v19 = vadd.s32 8, %v572_v1 }
  0x21   :  { %344 = vmatpush.msk.msra.mxu1 %vm158_vm7, %v533_v8  ;;  %376 = vmatpush.msk.msra.mxu3 %vm158_vm7, %v533_v8  ;;  %vm150_vm7 = vcmp.eq.s32.totalorder %v84_v16, %v579_v6 }
  0x22   :  { %329 = vmatpush.msk.msra.mxu0 %vm108_vm8, %v533_v8  ;;  %361 = vmatpush.msk.msra.mxu2 %vm108_vm8, %v533_v8  ;;  %vm100_vm8 = vcmp.eq.s32.totalorder %v83_v17, %v577_v5 }
  0x23   :  { %345 = vmatpush.msk.msra.mxu1 %vm157_vm9, %v533_v8  ;;  %377 = vmatpush.msk.msra.mxu3 %vm157_vm9, %v533_v8  ;;  %vm149_vm9 = vcmp.eq.s32.totalorder %v83_v17, %v579_v6 }
  0x24   :  { %330 = vmatpush.msk.msra.mxu0 %vm107_vm10, %v533_v8  ;;  %362 = vmatpush.msk.msra.mxu2 %vm107_vm10, %v533_v8  ;;  %vm99_vm10 = vcmp.eq.s32.totalorder %v82_v18, %v577_v5 }
  0x25   :  { %346 = vmatpush.msk.msra.mxu1 %vm156_vm11, %v533_v8  ;;  %378 = vmatpush.msk.msra.mxu3 %vm156_vm11, %v533_v8  ;;  %vm148_vm11 = vcmp.eq.s32.totalorder %v82_v18, %v579_v6 }
  0x26   :  { %331 = vmatpush.msk.msra.mxu0 %vm106_vm12, %v533_v8  ;;  %363 = vmatpush.msk.msra.mxu2 %vm106_vm12, %v533_v8  ;;  %vm98_vm12 = vcmp.eq.s32.totalorder %v81_v19, %v577_v5 }
  0x27   :  { %347 = vmatpush.msk.msra.mxu1 %vm155_vm13, %v533_v8  ;;  %379 = vmatpush.msk.msra.mxu3 %vm155_vm13, %v533_v8  ;;  %vm147_vm13 = vcmp.eq.s32.totalorder %v81_v19, %v579_v6 }
  0x28   :  { %332 = vmatpush.msk.msra.mxu0 %vm105_vm14, %v533_v8  ;;  %364 = vmatpush.msk.msra.mxu2 %vm105_vm14, %v533_v8  ;;  %vm97_vm14 = vcmp.eq.s32.totalorder %v572_v1, %v577_v5 }
  0x29   :  { %348 = vmatpush.msk.msra.mxu1 %vm154_vm15, %v533_v8  ;;  %380 = vmatpush.msk.msra.mxu3 %vm154_vm15, %v533_v8  ;;  %vm146_vm15 = vcmp.eq.s32.totalorder %v572_v1, %v579_v6 }
  0x2a   :  { %333 = vmatpush.msk.msra.mxu0 %vm104_vm0, %v533_v8  ;;  %365 = vmatpush.msk.msra.mxu2 %vm104_vm0, %v533_v8 }
  0x2b   :  { %349 = vmatpush.msk.msra.mxu1 %vm153_vm1, %v533_v8  ;;  %381 = vmatpush.msk.msra.mxu3 %vm153_vm1, %v533_v8 }
  0x2c   :  { %334 = vmatpush.msk.msra.mxu0 %vm103_vm2, %v533_v8  ;;  %366 = vmatpush.msk.msra.mxu2 %vm103_vm2, %v533_v8 }
  0x2d   :  { %350 = vmatpush.msk.msra.mxu1 %vm152_vm3, %v533_v8  ;;  %382 = vmatpush.msk.msra.mxu3 %vm152_vm3, %v533_v8 }
  0x2e   :  { %335 = vmatpush.msk.msra.mxu0 %vm102_vm4, %v533_v8  ;;  %367 = vmatpush.msk.msra.mxu2 %vm102_vm4, %v533_v8 }
  0x2f   :  { %351 = vmatpush.msk.msra.mxu1 %vm151_vm5, %v533_v8  ;;  %383 = vmatpush.msk.msra.mxu3 %vm151_vm5, %v533_v8 }
  0x30   :  { %336 = vmatpush.msk.msra.mxu0 %vm101_vm6, %v533_v8  ;;  %368 = vmatpush.msk.msra.mxu2 %vm101_vm6, %v533_v8 }
  0x31   :  { %352 = vmatpush.msk.msra.mxu1 %vm150_vm7, %v533_v8  ;;  %384 = vmatpush.msk.msra.mxu3 %vm150_vm7, %v533_v8 }
  0x32   :  { %337 = vmatpush.msk.msra.mxu0 %vm100_vm8, %v533_v8  ;;  %369 = vmatpush.msk.msra.mxu2 %vm100_vm8, %v533_v8 }
  0x33   :  { %353 = vmatpush.msk.msra.mxu1 %vm149_vm9, %v533_v8  ;;  %385 = vmatpush.msk.msra.mxu3 %vm149_vm9, %v533_v8 }
  0x34   :  { %338 = vmatpush.msk.msra.mxu0 %vm99_vm10, %v533_v8  ;;  %370 = vmatpush.msk.msra.mxu2 %vm99_vm10, %v533_v8 }
  0x35   :  { %354 = vmatpush.msk.msra.mxu1 %vm148_vm11, %v533_v8  ;;  %386 = vmatpush.msk.msra.mxu3 %vm148_vm11, %v533_v8 }
  0x36   :  { %339 = vmatpush.msk.msra.mxu0 %vm98_vm12, %v533_v8  ;;  %371 = vmatpush.msk.msra.mxu2 %vm98_vm12, %v533_v8 }
  0x37   :  { %355 = vmatpush.msk.msra.mxu1 %vm147_vm13, %v533_v8  ;;  %387 = vmatpush.msk.msra.mxu3 %vm147_vm13, %v533_v8 }
  0x38   :  { %340 = vmatpush.msk.msra.mxu0 %vm97_vm14, %v533_v8  ;;  %372 = vmatpush.msk.msra.mxu2 %vm97_vm14, %v533_v8 }
  0x39   :  { %356 = vmatpush.msk.msra.mxu1 %vm146_vm15, %v533_v8  ;;  %388 = vmatpush.msk.msra.mxu3 %vm146_vm15, %v533_v8 }
  0x3a   :  { %214 = vmatmul.f32.vlgmr.msra.gmra.mxu0 %v194_v20  ;;  %220 = vmatmul.f32.vlgmr.msra.gmra.mxu2 %v196_v21 }
  0x3b   :  { %247 = vmatmul.f32.vlgmr.msra.gmra.mxu1 %v227_v22  ;;  %253 = vmatmul.f32.vlgmr.msra.gmra.mxu3 %v229_v23 }
  0x42   :  { %217 = vmatmul.f32.gmra.mxu0 %v195_v24  ;;  %223 = vmatmul.f32.gmra.mxu2 %v197_v25 }
  0x43   :  { %250 = vmatmul.f32.gmra.mxu1 %v228_v26  ;;  %256 = vmatmul.f32.gmra.mxu3 %v230_v27 }
  0xb7   :  { %v215_v28 = vpop.f32.mrf.mxu0 }
  0xb8   :  { %v248_v29 = vpop.f32.mrf.mxu1 }
  0xb9   :  { %v260_v34 = vmul.f32 %v248_v29, %v215_v28 }
  0xbd   :  { %v221_v30 = vpop.f32.mrf.mxu2 }
  0xbe   :  { %v254_v31 = vpop.f32.mrf.mxu3 }
  0xbf   :  { %v218_v32 = vpop.f32.mrf.mxu0  ;;  %v262_v37 = vmul.f32 %v254_v31, %v221_v30 }
  0xc0   :  { %v251_v33 = vpop.f32.mrf.mxu1 }
  0xc1   :  { %v261_v35 = vmul.f32 %v251_v33, %v218_v32 }
  0xc3   :  { %v264_v36 = vadd.f32 %v261_v35, %v260_v34 }
  0xc5   :  { %v224_v38 = vpop.f32.mrf.mxu2  ;;  %v265_v41 = vadd.f32 %v264_v36, %v262_v37 }
  0xc6   :  { %v257_v39 = vpop.f32.mrf.mxu3 }
  0xc7   :  { %v263_v40 = vmul.f32 %v257_v39, %v224_v38 }
  0xc9   :  { %v266_v42 = vadd.f32 %v265_v41, %v263_v40 }
  0xcb   :  { %v267_v43 = vrot.slane %v266_v42, 4 }
  0xcd   :  { %v268_v44 = vadd.f32 %v267_v43, %v266_v42 }
  0xcf   :  { %v269_v45 = vrot.slane %v268_v44, 2 }
  0xd1   :  { %v270_v46 = vadd.f32 %v269_v45, %v268_v44 }
  0xd3   :  { %v271_v47 = vrot.slane %v270_v46, 1 }
  0xd5   :  { %v272_v48 = vadd.f32 %v271_v47, %v270_v46 }
  0xd7   :  { %273 = vst [vmem:[#allocation10] sm:$0x1] %v272_v48 }
  0xd8   :  { %284 = dma.vmem_to_hbm [thread:$0]  %s280_s3, 16, %s282_s11, [#allocation4]  }
  0xd9   :  { %525 = dma.done.wait [#allocation4], 16  }
  0xda   :  { %526 = vsyncadd [#allocation4], 4294967280 }
  0xdb   :  { %289 = vsyncpa [#allocation3], 1 }
  0xdc   :  { %290 = vsyncpa [#allocation6], 1 }
  0xdd   :  { %291 = vsyncpa [#allocation9], 1 }
  0xde   :  { %292 = vsyncpa [#allocation4], 1 }

</bundles_post_ra>
